<compile_context>
chip_gen: v7x
topology: tpu7x:2x2x1
jax: 0.10.0
libtpu: 0.0.40
codegen_flags: <defaults>
</compile_context>

<pallas_src>
import math
import functools

import jax
import jax.numpy as jnp
from jax import lax
from jax.experimental import pallas as pl
from jax.experimental.pallas import tpu as pltpu


# ----------------------------------------------------------------------------
# helpers
# ----------------------------------------------------------------------------

def _pick_block(dim, target, align):
    """Largest block <= target that is a multiple of `align` and divides `dim`.

    Falls back to the full dimension (always a legal BlockSpec block)."""
    if dim <= target:
        return dim
    c = (target // align) * align
    while c >= align:
        if dim % c == 0:
            return c
        c -= align
    return dim


def _vmem_limit(block_bytes, floor=32 * 1024 * 1024, headroom=4 * 1024 * 1024):
    """Scoped-VMEM limit: double-buffered blocks + headroom, at least `floor`."""
    return int(max(2 * block_bytes + headroom, floor))


# ----------------------------------------------------------------------------
# Tiled linear:  o = x @ w + b     (M, N, K grid, f32 VMEM accumulator)
# ----------------------------------------------------------------------------

def _linear_kernel(x_ref, w_ref, b_ref, o_ref, acc_ref):
    k = pl.program_id(2)

    @pl.when(k == 0)
    def _():
        acc_ref[...] = jnp.zeros_like(acc_ref)

    acc_ref[...] += jnp.dot(x_ref[...], w_ref[...],
                            preferred_element_type=jnp.float32)

    @pl.when(k == pl.num_programs(2) - 1)
    def _():
        # bias added once, on the last K step only
        o_ref[...] = (acc_ref[...] + b_ref[...].astype(jnp.float32)).astype(o_ref.dtype)


def pallas_linear(x2d, w, b, *, bm=256, bn=256, bk=512):
    """nn.Linear equivalent, tiled and pipelined over an (M, N, K) grid."""
    M, K = x2d.shape
    _, N = w.shape
    bm = _pick_block(M, bm, 8)     # sublane dim of x / o
    bn = _pick_block(N, bn, 128)   # lane dim of w / o
    bk = _pick_block(K, bk, 128)   # lane dim of x, sublane dim of w
    grid = (M // bm, N // bn, K // bk)

    esz = x2d.dtype.itemsize
    block_bytes = (bm * bk + bk * bn + bm * bn + bn) * esz + bm * bn * 4  # + acc

    return pl.pallas_call(
        _linear_kernel,
        out_shape=jax.ShapeDtypeStruct((M, N), x2d.dtype),
        grid_spec=pltpu.PrefetchScalarGridSpec(
            num_scalar_prefetch=0,
            grid=grid,
            in_specs=[
                pl.BlockSpec((bm, bk), lambda i, j, k: (i, k)),
                pl.BlockSpec((bk, bn), lambda i, j, k: (k, j)),
                pl.BlockSpec((1, bn), lambda i, j, k: (0, j)),
            ],
            out_specs=pl.BlockSpec((bm, bn), lambda i, j, k: (i, j)),
            scratch_shapes=[pltpu.VMEM((bm, bn), jnp.float32)],
        ),
        compiler_params=pltpu.CompilerParams(
            dimension_semantics=("parallel", "parallel", "arbitrary"),
            vmem_limit_bytes=_vmem_limit(block_bytes),
        ),
    )(x2d, w, b.reshape(1, N))


# ----------------------------------------------------------------------------
# Flash attention: grid (B, H, KV-tiles), online softmax, ctx output only
# ----------------------------------------------------------------------------

def _flash_attn_kernel(q_ref, k_ref, v_ref, m_ref, o_ref,
                       m_sc, l_sc, acc_sc, *, scale):
    kv = pl.program_id(2)

    @pl.when(kv == 0)
    def _():
        m_sc[...] = jnp.full_like(m_sc, -jnp.inf)
        l_sc[...] = jnp.zeros_like(l_sc)
        acc_sc[...] = jnp.zeros_like(acc_sc)

    q = q_ref[0, 0]                       # (Lq, d) native dtype — no f32 upcast
    k = k_ref[0, 0]                       # (tk, d)
    v = v_ref[0, 0]                       # (tk, d)

    # contract on the d axis of both operands: MXU consumes K "transposed"
    # natively, no k.T relayout copy in VMEM.
    s = lax.dot_general(q, k, (((1,), (1,)), ((), ())),
                        preferred_element_type=jnp.float32)
    s = s * scale                                         # scale f32 scores
    s = jnp.where(m_ref[0] != 0, jnp.float32(-1e18), s)   # int8 mask, nonzero = masked

    m_prev = m_sc[...]
    m_new = jnp.maximum(m_prev, jnp.max(s, axis=-1, keepdims=True))
    alpha = jnp.exp(m_prev - m_new)
    p = jnp.exp(s - m_new)
    l_sc[...] = alpha * l_sc[...] + jnp.sum(p, axis=-1, keepdims=True)
    acc_sc[...] = alpha * acc_sc[...] + jnp.dot(
        p.astype(v.dtype), v, preferred_element_type=jnp.float32)
    m_sc[...] = m_new

    @pl.when(kv == pl.num_programs(2) - 1)
    def _():
        inv = pl.reciprocal(l_sc[...], approx=False)      # one (Lq,1) reciprocal
        o_ref[0, 0] = (acc_sc[...] * inv).astype(o_ref.dtype)


def pallas_flash_attention(q_up, k_up, v_up, mask_i8, scale, *, block_k=512):
    """q_up/k_up/v_up: [B, H, L, d]; mask_i8: [B, Lq, Lk] int8 (nonzero = masked)."""
    B, H, Lq, d = q_up.shape
    Lk = k_up.shape[2]
    tk = _pick_block(Lk, block_k, 128)
    grid = (B, H, Lk // tk)

    esz = q_up.dtype.itemsize
    block_bytes = (Lq * d * esz + 2 * tk * d * esz + Lq * tk + Lq * d * esz
                   + (Lq * d + 2 * Lq) * 4)

    kernel = functools.partial(_flash_attn_kernel, scale=scale)
    return pl.pallas_call(
        kernel,
        out_shape=jax.ShapeDtypeStruct((B, H, Lq, d), q_up.dtype),
        grid_spec=pltpu.PrefetchScalarGridSpec(
            num_scalar_prefetch=0,
            grid=grid,
            in_specs=[
                pl.BlockSpec((1, 1, Lq, d), lambda b, h, kv: (b, h, 0, 0)),
                pl.BlockSpec((1, 1, tk, d), lambda b, h, kv: (b, h, kv, 0)),
                pl.BlockSpec((1, 1, tk, d), lambda b, h, kv: (b, h, kv, 0)),
                pl.BlockSpec((1, Lq, tk), lambda b, h, kv: (b, 0, kv)),
            ],
            out_specs=pl.BlockSpec((1, 1, Lq, d), lambda b, h, kv: (b, h, 0, 0)),
            scratch_shapes=[
                pltpu.VMEM((Lq, 1), jnp.float32),   # running max m
                pltpu.VMEM((Lq, 1), jnp.float32),   # running denom l
                pltpu.VMEM((Lq, d), jnp.float32),   # running context acc
            ],
        ),
        compiler_params=pltpu.CompilerParams(
            dimension_semantics=("parallel", "parallel", "arbitrary"),
            vmem_limit_bytes=_vmem_limit(block_bytes),
        ),
    )(q_up, k_up, v_up, mask_i8)


# ----------------------------------------------------------------------------
# Head-0 attention probabilities only (what the module actually returns)
# ----------------------------------------------------------------------------

def _top_attn_kernel(q_ref, k_ref, m_ref, a_ref, *, scale):
    q = q_ref[0, 0]                       # (Lq, d) head 0
    k = k_ref[0, 0]                       # (Lk, d) head 0
    s = lax.dot_general(q, k, (((1,), (1,)), ((), ())),
                        preferred_element_type=jnp.float32) * scale
    s = jnp.where(m_ref[0] != 0, jnp.float32(-1e18), s)
    s = s - jnp.max(s, axis=-1, keepdims=True)
    e = jnp.exp(s)
    a_ref[0] = e * pl.reciprocal(jnp.sum(e, axis=-1, keepdims=True), approx=False)


def pallas_top_attn(q_up, k_up, mask_i8, scale):
    """Head-0 attention probabilities [B, Lq, Lk] (float32)."""
    B, H, Lq, d = q_up.shape
    Lk = k_up.shape[2]
    esz = q_up.dtype.itemsize
    block_bytes = (Lq * d + Lk * d) * esz + Lq * Lk * (1 + 4)
    kernel = functools.partial(_top_attn_kernel, scale=scale)
    return pl.pallas_call(
        kernel,
        out_shape=jax.ShapeDtypeStruct((B, Lq, Lk), jnp.float32),
        grid=(B,),
        in_specs=[
            pl.BlockSpec((1, 1, Lq, d), lambda b: (b, 0, 0, 0)),
            pl.BlockSpec((1, 1, Lk, d), lambda b: (b, 0, 0, 0)),
            pl.BlockSpec((1, Lq, Lk), lambda b: (b, 0, 0)),
        ],
        out_specs=pl.BlockSpec((1, Lq, Lk), lambda b: (b, 0, 0)),
        compiler_params=pltpu.CompilerParams(
            dimension_semantics=("parallel",),
            vmem_limit_bytes=_vmem_limit(block_bytes),
        ),
    )(q_up, k_up, mask_i8)


# ----------------------------------------------------------------------------
# Module wrapper (parameters + glue reshapes in plain JAX)
# ----------------------------------------------------------------------------

class MultiHeadedAttentionPallas:
    def __init__(self, model_dim, head_count, dim_per_head=None, *, rng_key):
        if dim_per_head is None:
            assert model_dim % head_count == 0
            dim_per_head = model_dim // head_count
        self.head_count = head_count
        self.dim_per_head = dim_per_head
        self.model_dim = model_dim
        self.inner = head_count * dim_per_head
        inner = self.inner

        def init_linear(key, d_in, d_out):
            # PyTorch nn.Linear default init: U(-1/sqrt(d_in), 1/sqrt(d_in))
            kw, kb = jax.random.split(key)
            bound = 1.0 / math.sqrt(d_in)
            w = jax.random.uniform(kw, (d_in, d_out), jnp.float32, -bound, bound)
            b = jax.random.uniform(kb, (d_out,), jnp.float32, -bound, bound)
            return w, b

        k1, k2, k3, k4 = jax.random.split(rng_key, 4)
        Wk, bk = init_linear(k1, model_dim, inner)
        Wv, bv = init_linear(k2, model_dim, inner)
        Wq, bq = init_linear(k3, model_dim, inner)
        # fused [Wk | Wv | Wq] so self-attention does ONE projection matmul
        self.W_kvq = jnp.concatenate([Wk, Wv, Wq], axis=1)   # [D, 3*inner]
        self.b_kvq = jnp.concatenate([bk, bv, bq], axis=0)   # [3*inner]
        self.Wo, self.bo = init_linear(k4, inner, model_dim)

    # views of the fused projection parameters
    @property
    def Wk(self): return self.W_kvq[:, :self.inner]
    @property
    def Wv(self): return self.W_kvq[:, self.inner:2 * self.inner]
    @property
    def Wq(self): return self.W_kvq[:, 2 * self.inner:]
    @property
    def bk(self): return self.b_kvq[:self.inner]
    @property
    def bv(self): return self.b_kvq[self.inner:2 * self.inner]
    @property
    def bq(self): return self.b_kvq[2 * self.inner:]

    def _split_heads(self, x, batch):
        H, d = self.head_count, self.dim_per_head
        return x.reshape(batch, -1, H, d).transpose(0, 2, 1, 3)

    def __call__(self, key, value, query, mask=None,
                 enc_attn_cache=None, self_attn_cache=None):
        B, Lq, D = query.shape
        H, d, inner = self.head_count, self.dim_per_head, self.inner

        if enc_attn_cache is not None:
            key_up, value_up = enc_attn_cache
            q2 = pallas_linear(query.reshape(B * Lq, D), self.Wq, self.bq)
            query_up = self._split_heads(q2.reshape(B, Lq, inner), B)
        elif (key is value) and (value is query):
            # self-attention: fused QKV projection — one pass over the activation
            kvq = pallas_linear(query.reshape(B * Lq, D), self.W_kvq, self.b_kvq)
            kvq = kvq.reshape(B, Lq, 3, H, d).transpose(2, 0, 3, 1, 4)  # [3,B,H,L,d]
            key_up, value_up, query_up = kvq[0], kvq[1], kvq[2]
        else:
            Lk_in = key.shape[1]
            key_up = self._split_heads(
                pallas_linear(key.reshape(B * Lk_in, D), self.Wk, self.bk
                              ).reshape(B, Lk_in, inner), B)
            value_up = self._split_heads(
                pallas_linear(value.reshape(B * Lk_in, D), self.Wv, self.bv
                              ).reshape(B, Lk_in, inner), B)
            query_up = self._split_heads(
                pallas_linear(query.reshape(B * Lq, D), self.Wq, self.bq
                              ).reshape(B, Lq, inner), B)

        if self_attn_cache is not None:
            key_up_prev, value_up_prev = self_attn_cache
            key_up = jnp.concatenate([key_up_prev, key_up], axis=2)
            value_up = jnp.concatenate([value_up_prev, value_up], axis=2)

        Lk = key_up.shape[2]
        if mask is None:
            mask_i8 = jnp.zeros((B, Lq, Lk), jnp.int8)
        else:
            mask_i8 = (mask != 0).astype(jnp.int8)

        scale = 1.0 / math.sqrt(d)
        ctx = pallas_flash_attention(query_up, key_up, value_up, mask_i8, scale)
        top_attn = pallas_top_attn(query_up, key_up, mask_i8, scale)

        # combine heads: [B, H, Lq, d] -> [B*Lq, H*d]
        # TODO(synk): when dim_per_head is a multiple of 128, write ctx straight
        # into a lane-dense [B, Lq, H*d] output from the attention kernel
        # (head-indexed out_spec) and drop this relayout.
        context = ctx.transpose(0, 2, 1, 3).reshape(B * Lq, inner)
        output = pallas_linear(context, self.Wo, self.bo).reshape(B, Lq, self.model_dim)
        return output, top_attn, [key_up, value_up]


# ----------------------------------------------------------------------------
# Pure-JAX reference for validation
# ----------------------------------------------------------------------------

def reference_forward(mha, key, value, query, mask):
    B, Lk, D = key.shape
    Lq = query.shape[1]
    H, d = mha.head_count, mha.dim_per_head

    def split(x):
        return x.reshape(B, -1, H, d).transpose(0, 2, 1, 3)

    k_up = split(key @ mha.Wk + mha.bk)
    v_up = split(value @ mha.Wv + mha.bv)
    q_up = split(query @ mha.Wq + mha.bq) / math.sqrt(d)
    scores = jnp.einsum("bhqd,bhkd->bhqk", q_up, k_up)
    scores = jnp.where(mask[:, None, :, :] != 0, -1e18, scores)
    attn = jax.nn.softmax(scores, axis=-1)
    ctx = jnp.einsum("bhqk,bhkd->bhqd", attn, v_up)
    context = ctx.transpose(0, 2, 1, 3).reshape(B, Lq, H * d)
    out = context @ mha.Wo + mha.bo
    return out, attn[:, 0, :, :]


# ----------------------------------------------------------------------------
# Main
# ----------------------------------------------------------------------------

if __name__ == "__main__":
    B, L, MODEL_DIM, HEADS = 2, 8, 32, 4

    root = jax.random.PRNGKey(0)
    k_params, k_x, k_key, k_val, k_qry = jax.random.split(root, 5)

    mha = MultiHeadedAttentionPallas(MODEL_DIM, HEADS, rng_key=k_params)

    # deterministic mask: mask out the last two key positions for every query
    key_pos = jnp.arange(L)[None, None, :]                     # [1, 1, Lk]
    mask = jnp.broadcast_to(key_pos >= (L - 2), (B, L, L)).astype(jnp.int32)

    # --- case 1: self-attention (exercises the fused QKV projection path) ---
    x = jax.random.normal(k_x, (B, L, MODEL_DIM), jnp.float32)
    out1, top1, (k_up1, v_up1) = mha(x, x, x, mask)
    jax.block_until_ready(out1)
    jax.block_until_ready(top1)
    ref_out1, ref_top1 = reference_forward(mha, x, x, x, mask)
    assert jnp.allclose(out1, ref_out1, atol=1e-4, rtol=1e-4), "self-attn output mismatch"
    assert jnp.allclose(top1, ref_top1, atol=1e-5, rtol=1e-5), "self-attn attn mismatch"

    # --- case 2: distinct key / value / query (general projection path) ---
    key = jax.random.normal(k_key, (B, L, MODEL_DIM), jnp.float32)
    value = jax.random.normal(k_val, (B, L, MODEL_DIM), jnp.float32)
    query = jax.random.normal(k_qry, (B, L, MODEL_DIM), jnp.float32)
    out2, top2, _ = mha(key, value, query, mask)
    jax.block_until_ready(out2)
    jax.block_until_ready(top2)
    ref_out2, ref_top2 = reference_forward(mha, key, value, query, mask)
    assert jnp.allclose(out2, ref_out2, atol=1e-4, rtol=1e-4), "output mismatch"
    assert jnp.allclose(top2, ref_top2, atol=1e-5, rtol=1e-5), "attn mismatch"

    print("KERNEL_OK")
</pallas_src>

<mosaic_0001>
module attributes {stable_mosaic.version = 11 : i64} {
  func.func @_linear_kernel(%arg0: i32, %arg1: i32, %arg2: i32, %arg3: memref<16x32xf32, #tpu.memory_space<vmem>>, %arg4: memref<32x96xf32, #tpu.memory_space<vmem>>, %arg5: memref<1x96xf32, #tpu.memory_space<vmem>>, %arg6: memref<16x96xf32, #tpu.memory_space<vmem>>, %arg7: memref<16x96xf32, #tpu.memory_space<vmem>>) attributes {dimension_semantics = [#tpu.dimension_semantics<parallel>, #tpu.dimension_semantics<parallel>, #tpu.dimension_semantics<arbitrary>], iteration_bounds = array<i64: 1, 1, 1>, scalar_prefetch = 0 : i64, scratch_operands = 1 : i64, tpu.core_type = #tpu.core_type<tc>, window_params = [{transform_indices = @transform_0, window_bounds = array<i64: 16, 32>}, {transform_indices = @transform_1, window_bounds = array<i64: 32, 96>}, {transform_indices = @transform_2, window_bounds = array<i64: 1, 96>}, {transform_indices = @transform_3, window_bounds = array<i64: 16, 96>}]} {
    %c0_i32 = arith.constant 0 : i32
    %0 = arith.cmpi eq, %arg2, %c0_i32 : i32
    %1 = arith.extui %0 : i1 to i32
    %c0_i32_0 = arith.constant 0 : i32
    %2 = arith.cmpi ne, %1, %c0_i32_0 : i32
    scf.if %2 {
      %cst_10 = arith.constant 0.000000e+00 : f32
      %12 = vector.broadcast %cst_10 : f32 to vector<16x96xf32>
      %c0_11 = arith.constant 0 : index
      %c0_12 = arith.constant 0 : index
      %13 = vector.load %arg7[%c0_11, %c0_12] : memref<16x96xf32, #tpu.memory_space<vmem>>, vector<16x96xf32>
      tpu.vector_store %arg7[%c0_11, %c0_12], %12 {strides = array<i32>} : memref<16x96xf32, #tpu.memory_space<vmem>>, vector<16x96xf32>,
    } else {
    }
    %c0 = arith.constant 0 : index
    %c0_1 = arith.constant 0 : index
    %3 = vector.load %arg7[%c0, %c0_1] : memref<16x96xf32, #tpu.memory_space<vmem>>, vector<16x96xf32>
    %c0_2 = arith.constant 0 : index
    %c0_3 = arith.constant 0 : index
    %4 = vector.load %arg3[%c0_2, %c0_3] : memref<16x32xf32, #tpu.memory_space<vmem>>, vector<16x32xf32>
    %c0_4 = arith.constant 0 : index
    %c0_5 = arith.constant 0 : index
    %5 = vector.load %arg4[%c0_4, %c0_5] : memref<32x96xf32, #tpu.memory_space<vmem>>, vector<32x96xf32>
    %cst = arith.constant dense<0.000000e+00> : vector<16x96xf32>
    %6 = tpu.matmul %4, %5, %cst {dimension_numbers = #tpu.dot_dimension_numbers<[1], [0], [0], [1], [0, 0, 1, 1], [], []>} : vector<16x32xf32>, vector<32x96xf32>, vector<16x96xf32> -> vector<16x96xf32>
    %7 = arith.addf %3, %6 : vector<16x96xf32>
    %c0_6 = arith.constant 0 : index
    %c0_7 = arith.constant 0 : index
    %8 = vector.load %arg7[%c0_6, %c0_7] : memref<16x96xf32, #tpu.memory_space<vmem>>, vector<16x96xf32>
    tpu.vector_store %arg7[%c0_6, %c0_7], %7 {strides = array<i32>} : memref<16x96xf32, #tpu.memory_space<vmem>>, vector<16x96xf32>,
    %c0_i32_8 = arith.constant 0 : i32
    %9 = arith.cmpi eq, %arg2, %c0_i32_8 : i32
    %10 = arith.extui %9 : i1 to i32
    %c0_i32_9 = arith.constant 0 : i32
    %11 = arith.cmpi ne, %10, %c0_i32_9 : i32
    scf.if %11 {
      %c0_10 = arith.constant 0 : index
      %c0_11 = arith.constant 0 : index
      %12 = vector.load %arg7[%c0_10, %c0_11] : memref<16x96xf32, #tpu.memory_space<vmem>>, vector<16x96xf32>
      %c0_12 = arith.constant 0 : index
      %c0_13 = arith.constant 0 : index
      %13 = vector.load %arg5[%c0_12, %c0_13] : memref<1x96xf32, #tpu.memory_space<vmem>>, vector<1x96xf32>
      %14 = vector.broadcast %13 : vector<1x96xf32> to vector<16x96xf32>
      %15 = arith.addf %12, %14 : vector<16x96xf32>
      %c0_14 = arith.constant 0 : index
      %c0_15 = arith.constant 0 : index
      %16 = vector.load %arg6[%c0_14, %c0_15] : memref<16x96xf32, #tpu.memory_space<vmem>>, vector<16x96xf32>
      tpu.vector_store %arg6[%c0_14, %c0_15], %15 {strides = array<i32>} : memref<16x96xf32, #tpu.memory_space<vmem>>, vector<16x96xf32>,
    } else {
    }
    return
  }
  func.func @transform_0(%arg0: i32, %arg1: i32, %arg2: i32) -> (i32, i32) {
    %c0_i32 = arith.constant 0 : i32
    return %arg0, %arg2 : i32, i32
  }
  func.func @transform_1(%arg0: i32, %arg1: i32, %arg2: i32) -> (i32, i32) {
    %c0_i32 = arith.constant 0 : i32
    return %arg2, %arg1 : i32, i32
  }
  func.func @transform_2(%arg0: i32, %arg1: i32, %arg2: i32) -> (i32, i32) {
    %c0_i32 = arith.constant 0 : i32
    %c0_i32_0 = arith.constant 0 : i32
    return %c0_i32, %arg1 : i32, i32
  }
  func.func @transform_3(%arg0: i32, %arg1: i32, %arg2: i32) -> (i32, i32) {
    %c0_i32 = arith.constant 0 : i32
    return %arg0, %arg1 : i32, i32
  }
}

</mosaic_0001>

<bundles_post_ra>
// kernel: tpu_custom_call.1
= control target key start
LH: loop header
LB: loop body
LE: loop exit
PB: predicated region body
PF: predicated region fallthrough
CT: control target
= control target key end

     0   :  { %8 = vsyncpa [#allocation4], 0  ;;  %s365_s0 = inlined_call_operand.hbm [shape: f32[16,32], index: 0, kind: input, shape index: {}]   ;;  %s366_s1 = inlined_call_operand.hbm [shape: f32[32,96], index: 1, kind: input, shape index: {}]   ;;  %s367_s2 = inlined_call_operand.vmem [shape: f32[1,96], index: 2, kind: input, shape index: {}]   ;;  %s368_s3 = inlined_call_operand.hbm [shape: f32[16,96], index: 3, kind: output, shape index: {}]  }
   0x1   :  { %9 = vsyncpa [#allocation7], 0 }
   0x2   :  { %10 = vsyncpa [#allocation5], 0  ;;  %s285_s12 = smov [#allocation3]   ;;  %s213_s16 = scalar_lea.hbm %s365_s0, 256 }
   0x3   :  { %s16_s13 = sshll.u32 %s285_s12, 4  ;;  %p214_p0 = scmp.ne.s32.totalorder %s365_s0, %s213_s16  ;;  %s17_s13 = int_to_ptr.vmem [resolvable:$true] %s16_s13 }
   0x4   :  { %p217_p1 = scmp.lt.u32.totalorder %s213_s16, %s365_s0 }
   0x6   :  { %p219_p2 = pnand %p217_p1, %p214_p0 }
   0x8   :  { %222 = shalt.err (!%p219_p2)
}
   0x9   :  { %s223_s21 = scalar_lea.vmem %s17_s13, 256  ;;  %p228_p4 = scmp.lt.s32.totalorder %s17_s13, %s17_s13 }
   0xa   :  { %p224_p3 = scmp.ne.s32.totalorder %s17_s13, %s223_s21  ;;  %p229_p5 = scmp.lt.s32.totalorder %s223_s21, %s223_s21 }
   0xc   :  { %p230_p6 = por %p229_p5, %p228_p4 }
   0xe   :  { %p231_p7 = pnand %p230_p6, %p224_p3 }
  0x10   :  { %234 = shalt.err (!%p231_p7)
}
  0x11   :  { %s286_s22 = smov 128   ;;  %s287_s23 = smov 8  }
  0x12   :  { %22 = dma.hbm_to_vmem [thread:$0]  %s365_s0, 256, %s17_s13, [#allocation4], %s286_s22, %s286_s22, %s287_s23  }
  0x13   :  { %s288_s26 = smov [#allocation6]   ;;  %s235_s30 = scalar_lea.hbm %s366_s1, 512 }
  0x14   :  { %s28_s27 = sshll.u32 %s288_s26, 4  ;;  %p236_p8 = scmp.ne.s32.totalorder %s366_s1, %s235_s30  ;;  %s29_s27 = int_to_ptr.vmem [resolvable:$true] %s28_s27 }
  0x15   :  { %p239_p9 = scmp.lt.u32.totalorder %s235_s30, %s366_s1 }
  0x17   :  { %p241_p10 = pnand %p239_p9, %p236_p8 }
  0x19   :  { %244 = shalt.err (!%p241_p10)
}
  0x1a   :  { %s245_s8 = scalar_lea.vmem %s29_s27, 512  ;;  %p250_p12 = scmp.lt.s32.totalorder %s29_s27, %s29_s27 }
  0x1b   :  { %p246_p11 = scmp.ne.s32.totalorder %s29_s27, %s245_s8  ;;  %p251_p13 = scmp.lt.s32.totalorder %s245_s8, %s245_s8 }
  0x1d   :  { %p252_p0 = por %p251_p13, %p250_p12 }
  0x1f   :  { %p253_p1 = pnand %p252_p0, %p246_p11 }
  0x21   :  { %256 = shalt.err (!%p253_p1)
}
  0x22   :  { %34 = dma.hbm_to_vmem [thread:$0]  %s366_s1, 512, %s29_s27, [#allocation7], %s286_s22, %s286_s22, %s287_s23  }
  0x23   :  { %279 = dma.done.wait [#allocation4], 256  }
  0x24   :  { %280 = vsyncadd [#allocation4], 4294967040 }
  0x25   :  { %281 = dma.done.wait [#allocation7], 512  }
  0x26   :  { %282 = vsyncadd [#allocation7], 4294966784  ;;  %vm47_vm0 = vcmask 785408   ;;  %v289_v0 = vmov 0.0   ;;  %vm58_vm1 = vcmask 261120   ;;  %v54_v1 = vld [vmem:[#allocation6] sm:$0xff] }
  0x27   :  { %49 = vst.msk [vmem:[#allocation2 + $0x8] sm:$0xff] %vm47_vm0, %v289_v0  ;;  %48 = vst.msk [vmem:[#allocation2] sm:$0xff] %vm47_vm0, %v289_v0  ;;  %v55_v2 = vld [vmem:[#allocation6 + $0x8] sm:$0xff]  ;;  %v56_v3 = vld [vmem:[#allocation6 + $0x10] sm:$0xff]  ;;  %s290_s11 = smov [#allocation8]  }
  0x28   :  { %v199_v4 = vpack.c.bf16 %v55_v2, %v54_v1  ;;  %v57_v5 = vld [vmem:[#allocation6 + $0x18] sm:$0xff]  ;;  %v52_v6 = vld [vmem:[#allocation3] sm:$0xff]  ;;  %v181_v15 = vld [vmem:[%s367_s2] ss:$0 sm:$0xff]  ;;  %s166_s12 = sshll.u32 %s290_s11, 4  ;;  %s167_s12 = int_to_ptr.vmem [resolvable:$true] %s166_s12 }
  0x29   :  { %v203_v7 = vpack.c.bf16 %v57_v5, %v56_v3  ;;  %196 = vmatprep.mubr.msk.f32.mxu0 %vm58_vm1, %v52_v6  ;;  %v53_v8 = vld [vmem:[#allocation3 + $0x8] sm:$0xff]  ;;  %s257_s13 = scalar_lea.vmem %s167_s12, 256  ;;  %p262_p3 = scmp.lt.s32.totalorder %s167_s12, %s167_s12 }
  0x2a   :  { %200 = vmatprep.subr.bf16.mxu0 %v199_v4  ;;  %p258_p2 = scmp.ne.s32.totalorder %s167_s12, %s257_s13  ;;  %p263_p4 = scmp.lt.s32.totalorder %s257_s13, %s257_s13 }
  0x2b   :  { %202 = vmatpush3.bf16.msra.mxu0 %v199_v4 }
  0x2c   :  { %204 = vmatprep.subr.bf16.mxu0 %v203_v7  ;;  %p264_p5 = por %p263_p4, %p262_p3 }
  0x2e   :  { %v51_v9 = vld [vmem:[#allocation2 + $0x8] sm:$0xff]  ;;  %v50_v10 = vld [vmem:[#allocation2] sm:$0xff]  ;;  %p265_p6 = pnand %p264_p5, %p258_p2 }
  0x2f   :  { %206 = vmatpush3.bf16.msra.mxu0 %v203_v7 }
  0x32   :  { %197 = vmatmul.mubr.msk.f32.vlgmr.msra.gmra.mrb[0].mxu0 %vm58_vm1, %v53_v8 }
 0x105   :  { %v198_v11 = vpop.f32.mrb[0].mxu0 }
 0x106   :  { %v141_v12 = vadd.f32 %v198_v11, %v51_v9  ;;  %v131_v13 = vpop.f32.mrb[1].mxu0 }
 0x107   :  { %v140_v14 = vadd.f32 %v131_v13, %v50_v10 }
 0x108   :  { %144 = vst.msk [vmem:[#allocation2 + $0x8] sm:$0xff] %vm47_vm0, %v141_v12 }
 0x109   :  { %143 = vst.msk [vmem:[#allocation2] sm:$0xff] %vm47_vm0, %v140_v14 }
 0x10f   :  { %v149_v16 = vld [vmem:[#allocation2 + $0x8] sm:$0xff] }
 0x110   :  { %v148_v17 = vld [vmem:[#allocation2] sm:$0xff]  ;;  %v158_v18 = vadd.f32 %v181_v15, %v149_v16 }
 0x111   :  { %v157_v19 = vadd.f32 %v181_v15, %v148_v17 }
 0x112   :  { %160 = vst.msk [vmem:[#allocation8 + $0x8] sm:$0xff] %vm47_vm0, %v158_v18 }
 0x113   :  { %159 = vst.msk [vmem:[#allocation8] sm:$0xff] %vm47_vm0, %v157_v19 }
 0x114   :  { %268 = shalt.err (!%p265_p6)
}
 0x115   :  { %s269_s15 = scalar_lea.hbm %s368_s3, 256 }
 0x116   :  { %p270_p7 = scmp.ne.s32.totalorder %s368_s3, %s269_s15  ;;  %p273_p8 = scmp.lt.u32.totalorder %s269_s15, %s368_s3 }
 0x118   :  { %p275_p9 = pnand %p273_p8, %p270_p7 }
 0x11a   :  { %278 = shalt.err (!%p275_p9)
}
 0x11b   :  { %172 = dma.vmem_to_hbm [thread:$0]  %s167_s12, 256, %s368_s3, [#allocation5], %s286_s22, %s286_s22, %s287_s23  }
 0x11c   :  { %283 = dma.done.wait [#allocation5], 256  }
 0x11d   :  { %284 = vsyncadd [#allocation5], 4294967040 }
 0x11e   :  { %176 = vsyncpa [#allocation4], 1 }
 0x11f   :  { %177 = vsyncpa [#allocation7], 1 }
 0x120   :  { %178 = vsyncpa [#allocation5], 1 }

</bundles_post_ra>
